<compile_context>
chip_gen: v6e
topology: v6e:2x2x1
jax: 0.10.0
libtpu: 0.0.40
codegen_flags: <defaults>
</compile_context>

<pallas_src>
import functools

import jax
import jax.numpy as jnp
from jax.experimental import pallas as pl
from jax.experimental.pallas import tpu as pltpu


def _round_up(x: int, m: int) -> int:
    return ((x + m - 1) // m) * m


def _pick_tk(K: int, tk_max: int) -> int:
    """Largest K-tile <= tk_max that is a multiple of 128 and, when possible,
    divides K exactly (so the activation never needs K-padding per call)."""
    tk_max = max(128, (tk_max // 128) * 128)
    if K <= tk_max:
        return _round_up(K, 128)
    if K % 128 == 0:
        base = K // 128
        best = 1
        for d in range(1, tk_max // 128 + 1):
            if base % d == 0:
                best = d
        return best * 128
    return tk_max


# ---------------------------------------------------------------------------
# Kernels
# ---------------------------------------------------------------------------
def _fh_kernel_single(x_ref, w_ref, b_ref, o_ref):
    # Whole K contraction in one step: no accumulator scratch / init gating.
    #   x_ref: [TM, K_pad] bf16   w_ref: [K_pad, N_pad] bf16 (VMEM-resident)
    #   b_ref: [1, N_pad]  f32    o_ref: [TM, N_pad]
    acc = jnp.dot(x_ref[...], w_ref[...], preferred_element_type=jnp.float32)
    o_ref[...] = (acc + b_ref[...]).astype(o_ref.dtype)


def _fh_kernel_acc(x_ref, w_ref, b_ref, o_ref, acc_ref, *, tk, w_resident):
    # K-tiled reduction with a resident f32 accumulator.
    #   x_ref: [TM, TK] bf16
    #   w_ref: [K_pad, N_pad] bf16 if w_resident (one HBM fetch per call),
    #          else [TK, N_pad] bf16 (streamed per K step)
    # NOTE: correctness of the shared acc_ref relies on K being the innermost,
    # "arbitrary" grid axis (fully reduced before the M block index advances).
    k = pl.program_id(1)
    if w_resident:
        off = pl.multiple_of(k * tk, tk)
        w_chunk = w_ref[pl.ds(off, tk), :]
    else:
        w_chunk = w_ref[...]
    partial = jnp.dot(x_ref[...], w_chunk, preferred_element_type=jnp.float32)

    @pl.when(k == 0)
    def _():                       # first step: plain write (no zero-fill+RMW)
        acc_ref[...] = partial

    @pl.when(k != 0)
    def _():
        acc_ref[...] += partial

    @pl.when(k == pl.num_programs(1) - 1)
    def _():
        o_ref[...] = (acc_ref[...] + b_ref[...]).astype(o_ref.dtype)


# ---------------------------------------------------------------------------
# Wrapper
# ---------------------------------------------------------------------------
def make_flatten_head(weight, bias, *, tm=256, tk=1024,
                      compute_dtype=jnp.bfloat16,
                      weight_resident_budget_bytes=12 * 1024 * 1024):
    """Build a Flatten_Head forward fn; all weight/bias prep happens ONCE here.

    weight: [pred_len, seq_len*d_model]  (PyTorch nn.Linear layout)
    bias  : [pred_len]
    Returns forward(x: [B, V, S, D]) -> [B, V, pred_len].
    """
    N, K = weight.shape

    # ---- K / N tiling (depends only on parameter shapes) --------------------
    TK = _pick_tk(K, tk)
    K_pad = _round_up(K, TK)
    n_k = K_pad // TK
    N_pad = _round_up(N, 128)                     # lane-dense output
    in_itemsize = jnp.dtype(compute_dtype).itemsize
    w_bytes = K_pad * N_pad * in_itemsize
    # Keep the whole weight VMEM-resident (single HBM fetch per call) if it
    # fits a conservative budget (headroom for buffering & v7x's 64 MiB VMEM).
    w_resident = (n_k == 1) or (w_bytes <= weight_resident_budget_bytes)

    # ---- One-time parameter prep: transpose -> pad -> cast ------------------
    w_kn = jnp.asarray(weight).T                                  # [K, N]
    w_kn = jnp.pad(w_kn, ((0, K_pad - K), (0, N_pad - N))).astype(compute_dtype)
    b_row = jnp.pad(jnp.asarray(bias, jnp.float32).reshape(1, N),
                    ((0, 0), (0, N_pad - N)))                     # [1, N_pad]

    @jax.jit
    def forward(x):
        B, V, S, D = x.shape
        assert S * D == K, "x inner dims must match seq_len*d_model"
        M = B * V
        out_dtype = x.dtype
        out_itemsize = jnp.dtype(out_dtype).itemsize

        # ---- Row tiling (shapes are static under jit) -----------------------
        TM = min(tm, _round_up(M, 8))
        if M >= 16 and M <= TM:
            # Split small M across >=2 row tiles so the "parallel" axis feeds
            # both v7x TensorCores (weight is resident -> no extra W traffic).
            TM = _round_up(-(-M // 2), 8)
        M_pad = _round_up(M, TM)
        grid_m = M_pad // TM

        # bf16 activations over the DMA (half the HBM bytes).  In a full model
        # the upstream op would emit this dtype / the cast fuses there.
        x2d = x.reshape(M, K)
        if x2d.dtype != compute_dtype:
            x2d = x2d.astype(compute_dtype)
        if (M_pad, K_pad) != (M, K):
            # TK divides K whenever possible, so this normally pads only a few
            # rows (cheap) and never the K axis.
            x2d = jnp.pad(x2d, ((0, M_pad - M), (0, K_pad - K)))

        if n_k == 1:
            grid = (grid_m,)
            kernel = _fh_kernel_single
            in_specs = [
                pl.BlockSpec((TM, K_pad), lambda i: (i, 0)),       # X tile
                pl.BlockSpec((K_pad, N_pad), lambda i: (0, 0)),    # resident W
                pl.BlockSpec((1, N_pad), lambda i: (0, 0)),        # bias
            ]
            out_specs = pl.BlockSpec((TM, N_pad), lambda i: (i, 0))
            scratch_shapes = []
            dim_sem = ("parallel",)
            acc_bytes = 0
            w_block_rows = K_pad
        else:
            grid = (grid_m, n_k)
            kernel = functools.partial(_fh_kernel_acc, tk=TK,
                                       w_resident=w_resident)
            if w_resident:
                w_spec = pl.BlockSpec((K_pad, N_pad), lambda i, k: (0, 0))
                w_block_rows = K_pad
            else:
                w_spec = pl.BlockSpec((TK, N_pad), lambda i, k: (k, 0))
                w_block_rows = TK
            in_specs = [
                pl.BlockSpec((TM, TK), lambda i, k: (i, k)),       # X tile
                w_spec,                                            # W
                pl.BlockSpec((1, N_pad), lambda i, k: (0, 0)),     # bias
            ]
            out_specs = pl.BlockSpec((TM, N_pad), lambda i, k: (i, 0))
            scratch_shapes = [pltpu.VMEM((TM, N_pad), jnp.float32)]
            # K innermost + "arbitrary" is REQUIRED for the shared accumulator.
            dim_sem = ("parallel", "arbitrary")
            acc_bytes = TM * N_pad * 4

        # ---- VMEM budget from the actual tile footprint ---------------------
        vmem_bytes = (
            2 * TM * TK * in_itemsize                 # x tile, double-buffered
            + 2 * w_block_rows * N_pad * in_itemsize  # weight block(s)
            + 2 * 8 * N_pad * 4                       # bias (sublane-padded)
            + 2 * TM * N_pad * out_itemsize           # out tile, double-buffered
            + acc_bytes)
        vmem_limit = int(min(max(vmem_bytes * 3 // 2 + (1 << 20), 8 << 20),
                             64 << 20))

        w_reads = 1 if w_resident else grid_m
        cost = pl.CostEstimate(
            flops=2 * M_pad * K_pad * N_pad,
            transcendentals=0,
            bytes_accessed=(M_pad * K_pad * in_itemsize
                            + w_reads * K_pad * N_pad * in_itemsize
                            + N_pad * 4
                            + M_pad * N_pad * out_itemsize),
        )

        out2d = pl.pallas_call(
            kernel,
            out_shape=jax.ShapeDtypeStruct((M_pad, N_pad), out_dtype),
            grid_spec=pltpu.PrefetchScalarGridSpec(
                num_scalar_prefetch=0,
                grid=grid,
                in_specs=in_specs,
                out_specs=out_specs,
                scratch_shapes=scratch_shapes,
            ),
            compiler_params=pltpu.CompilerParams(
                dimension_semantics=dim_sem,
                vmem_limit_bytes=vmem_limit,
            ),
            cost_estimate=cost,
        )(x2d, w_kn, b_row)

        # Dropout(head_dropout=0) is the identity.
        # TODO(synk): training-mode dropout (p>0) would use pltpu.prng_seed +
        # pltpu.prng_random_bits inside the kernel.
        return out2d[:M, :N].reshape(B, V, N)

    return forward


if __name__ == "__main__":
    # Shapes consistent with the module: batch=2, n_vars=4, seq_len=8,
    # d_model=32, pred_len=16  (K = seq_len*d_model = 256).
    B, V, S, D, P = 2, 4, 8, 32, 16

    key = jax.random.PRNGKey(0)
    kx, kw, kb, kx2 = jax.random.split(key, 4)

    x = jax.random.normal(kx, (B, V, S, D), dtype=jnp.float32)
    # Deterministic synthetic nn.Linear(seq_len*d_model, pred_len) params.
    weight = jax.random.normal(kw, (P, S * D), dtype=jnp.float32) * 0.02
    bias = jax.random.normal(kb, (P,), dtype=jnp.float32) * 0.02

    # ---- Path 1: single-K-tile kernel (whole contraction in one step) ------
    forward = make_flatten_head(weight, bias)      # one-time parameter prep
    out = jax.block_until_ready(forward(x))

    ref = x.reshape(B, V, S * D) @ weight.T + bias
    assert out.shape == (B, V, P)
    # bf16 MXU inputs with f32 accumulation -> loosened tolerance.
    assert jnp.allclose(out, ref, atol=1e-2, rtol=1e-2), "single-K path mismatch"

    # ---- Path 2: K-tiled accumulator kernel with VMEM-resident weight ------
    x2 = jax.random.normal(kx2, (2, 3, S, D), dtype=jnp.float32)  # ragged M=6
    forward2 = make_flatten_head(weight, bias, tk=128)            # forces n_k=2
    out2 = jax.block_until_ready(forward2(x2))
    ref2 = x2.reshape(2, 3, S * D) @ weight.T + bias
    assert out2.shape == (2, 3, P)
    assert jnp.allclose(out2, ref2, atol=1e-2, rtol=1e-2), "K-tiled path mismatch"

    print("KERNEL_OK")
</pallas_src>

<mosaic_0001>
module attributes {stable_mosaic.version = 11 : i64} {
  func.func @_fh_kernel_single(%arg0: i32, %arg1: memref<8x256xbf16, #tpu.memory_space<vmem>>, %arg2: memref<256x128xbf16, #tpu.memory_space<vmem>>, %arg3: memref<1x128xf32, #tpu.memory_space<vmem>>, %arg4: memref<8x128xf32, #tpu.memory_space<vmem>>) attributes {dimension_semantics = [#tpu.dimension_semantics<parallel>], iteration_bounds = array<i64: 1>, scalar_prefetch = 0 : i64, scratch_operands = 0 : i64, tpu.core_type = #tpu.core_type<tc>, window_params = [{transform_indices = @transform_0, window_bounds = array<i64: 8, 256>}, {pipeline_mode = #tpu.pipeline_mode<synchronous>, transform_indices = @transform_1, window_bounds = array<i64: 256, 128>}, {pipeline_mode = #tpu.pipeline_mode<synchronous>, transform_indices = @transform_2, window_bounds = array<i64: 1, 128>}, {transform_indices = @transform_3, window_bounds = array<i64: 8, 128>}]} {
    %c0 = arith.constant 0 : index
    %c0_0 = arith.constant 0 : index
    %0 = vector.load %arg1[%c0, %c0_0] : memref<8x256xbf16, #tpu.memory_space<vmem>>, vector<8x256xbf16>
    %c0_1 = arith.constant 0 : index
    %c0_2 = arith.constant 0 : index
    %1 = vector.load %arg2[%c0_1, %c0_2] : memref<256x128xbf16, #tpu.memory_space<vmem>>, vector<256x128xbf16>
    %cst = arith.constant dense<0.000000e+00> : vector<8x128xf32>
    %2 = tpu.matmul %0, %1, %cst {dimension_numbers = #tpu.dot_dimension_numbers<[1], [0], [0], [1], [0, 0, 1, 1], [], []>} : vector<8x256xbf16>, vector<256x128xbf16>, vector<8x128xf32> -> vector<8x128xf32>
    %c0_3 = arith.constant 0 : index
    %c0_4 = arith.constant 0 : index
    %3 = vector.load %arg3[%c0_3, %c0_4] : memref<1x128xf32, #tpu.memory_space<vmem>>, vector<1x128xf32>
    %4 = vector.broadcast %3 : vector<1x128xf32> to vector<8x128xf32>
    %5 = arith.addf %2, %4 : vector<8x128xf32>
    %c0_5 = arith.constant 0 : index
    %c0_6 = arith.constant 0 : index
    %6 = vector.load %arg4[%c0_5, %c0_6] : memref<8x128xf32, #tpu.memory_space<vmem>>, vector<8x128xf32>
    tpu.vector_store %arg4[%c0_5, %c0_6], %5 {strides = array<i32>} : memref<8x128xf32, #tpu.memory_space<vmem>>, vector<8x128xf32>,
    return
  }
  func.func @transform_0(%arg0: i32) -> (i32, i32) {
    %c0_i32 = arith.constant 0 : i32
    %c0_i32_0 = arith.constant 0 : i32
    return %arg0, %c0_i32 : i32, i32
  }
  func.func @transform_1(%arg0: i32) -> (i32, i32) {
    %c0_i32 = arith.constant 0 : i32
    %c0_i32_0 = arith.constant 0 : i32
    %c0_i32_1 = arith.constant 0 : i32
    return %c0_i32, %c0_i32_0 : i32, i32
  }
  func.func @transform_2(%arg0: i32) -> (i32, i32) {
    %c0_i32 = arith.constant 0 : i32
    %c0_i32_0 = arith.constant 0 : i32
    %c0_i32_1 = arith.constant 0 : i32
    return %c0_i32, %c0_i32_0 : i32, i32
  }
  func.func @transform_3(%arg0: i32) -> (i32, i32) {
    %c0_i32 = arith.constant 0 : i32
    %c0_i32_0 = arith.constant 0 : i32
    return %arg0, %c0_i32 : i32, i32
  }
}

</mosaic_0001>

<bundles_post_ra>
// kernel: forward.1
= control target key start
LH: loop header
LB: loop body
LE: loop exit
PB: predicated region body
PF: predicated region fallthrough
CT: control target
= control target key end

     0   :  { %s374_s0 = inlined_call_operand.vmem [shape: bf16[8,256], index: 0, kind: input, shape index: {}]   ;;  %s375_s1 = inlined_call_operand.vmem [shape: bf16[256,128], index: 1, kind: input, shape index: {}]   ;;  %s376_s2 = inlined_call_operand.vmem [shape: f32[1,128], index: 2, kind: input, shape index: {}]   ;;  %s377_s3 = inlined_call_operand.hbm [shape: f32[8,128], index: 3, kind: output, shape index: {}]  }
   0x1   :  { %v256_v0 = vld [vmem:[%s375_s1 + $0x78] sm:$0xff]   ;;  %v258_v2 = vld [vmem:[%s375_s1 + $0x70] sm:$0xff]   ;;  %v260_v4 = vld [vmem:[%s375_s1 + $0x68] sm:$0xff]  }
   0x2   :  { %v257_v1 = vld [vmem:[%s375_s1 + $0x38] sm:$0xff]   ;;  %233 = vmatprep.subr.bf16.mxu0 %v256_v0  ;;  %v259_v3 = vld [vmem:[%s375_s1 + $0x30] sm:$0xff]   ;;  %v261_v5 = vld [vmem:[%s375_s1 + $0x28] sm:$0xff]  }
   0x3   :  { %234 = vmatpush3.bf16.msra.mxu0 %v257_v1  ;;  %v262_v6 = vld [vmem:[%s375_s1 + $0x60] sm:$0xff]   ;;  %v264_v8 = vld [vmem:[%s375_s1 + $0x58] sm:$0xff]   ;;  %v266_v10 = vld [vmem:[%s375_s1 + $0x50] sm:$0xff]  }
   0x4   :  { %235 = vmatprep.subr.bf16.mxu0 %v258_v2  ;;  %v263_v7 = vld [vmem:[%s375_s1 + $0x20] sm:$0xff]   ;;  %v265_v9 = vld [vmem:[%s375_s1 + $0x18] sm:$0xff]  }
   0x5   :  { %v16_v11 = vld [vmem:[%s374_s0] sm:$0xff] }
   0x7   :  { %236 = vmatpush3.bf16.msra.mxu0 %v259_v3 }
   0x8   :  { %237 = vmatprep.subr.bf16.mxu0 %v260_v4 }
   0xb   :  { %238 = vmatpush3.bf16.msra.mxu0 %v261_v5 }
   0xc   :  { %239 = vmatprep.subr.bf16.mxu0 %v262_v6 }
   0xf   :  { %240 = vmatpush3.bf16.msra.mxu0 %v263_v7 }
  0x10   :  { %241 = vmatprep.subr.bf16.mxu0 %v264_v8 }
  0x11   :  { %8 = vsyncpa [#allocation3], 0  ;;  %v216_v12 = vcombine.high %v16_v11, %v16_v11  ;;  %v267_v13 = vld [vmem:[%s375_s1 + $0x10] sm:$0xff]   ;;  %v268_v14 = vld [vmem:[%s375_s1 + $0x48] sm:$0xff]   ;;  %v215_v18 = vcombine.low %v16_v11, %v16_v11  ;;  %s296_s20 = smov [#allocation2]  }
  0x12   :  { %v269_v15 = vld [vmem:[%s375_s1 + $0x8] sm:$0xff]   ;;  %v270_v16 = vld [vmem:[%s375_s1 + $0x40] sm:$0xff]   ;;  %s206_s21 = sshll.u32 %s296_s20, 4  ;;  %s207_s21 = int_to_ptr.vmem [resolvable:$true] %s206_s21 }
  0x13   :  { %242 = vmatpush3.bf16.msra.mxu0 %v265_v9  ;;  %191 = vmatprep.mubr.bf16.mxu0 %v216_v12  ;;  %v271_v17 = vld [vmem:[%s375_s1] sm:$0xff]   ;;  %s274_s22 = scalar_lea.vmem %s207_s21, 128  ;;  %p279_p1 = scmp.lt.s32.totalorder %s207_s21, %s207_s21 }
  0x14   :  { %243 = vmatprep.subr.bf16.mxu0 %v266_v10  ;;  %v214_v21 = vld [vmem:[%s376_s2] ss:$0 sm:$0xff]  ;;  %p275_p0 = scmp.ne.s32.totalorder %s207_s21, %s274_s22  ;;  %p280_p2 = scmp.lt.s32.totalorder %s274_s22, %s274_s22 }
  0x16   :  { %p281_p3 = por %p280_p2, %p279_p1 }
  0x17   :  { %244 = vmatpush3.bf16.msra.mxu0 %v267_v13 }
  0x18   :  { %245 = vmatprep.subr.bf16.mxu0 %v268_v14  ;;  %p282_p4 = pnand %p281_p3, %p275_p0 }
  0x1b   :  { %246 = vmatpush3.bf16.msra.mxu0 %v269_v15 }
  0x1c   :  { %247 = vmatprep.subr.bf16.mxu0 %v270_v16 }
  0x1f   :  { %248 = vmatpush3.bf16.msra.mxu0 %v271_v17 }
  0x22   :  { %192 = vmatmul.mubr.bf16.vlgmr.msra.gmra.mxu0 %v215_v18 }
  0xe2   :  { %v249_v19 = vpop.f32.mrf.mxu0 }
  0xe4   :  { %v250_v20 = vpop.f32.mrf.mxu0 }
  0xe5   :  { %v251_v22 = vadd.f32 %v250_v20, %v249_v19 }
  0xe6   :  { %v252_v23 = vpop.f32.mrf.mxu0 }
  0xe7   :  { %v194_v24 = vadd.f32 %v251_v22, %v214_v21 }
  0xe8   :  { %v253_v25 = vpop.f32.mrf.mxu0 }
  0xe9   :  { %199 = vst [vmem:[#allocation2] sm:$0xff] %v194_v24 }
  0xea   :  { %285 = shalt.err (!%p282_p4)
}
  0xeb   :  { %209 = dma.vmem_to_hbm [thread:$0]  %s207_s21, 128, %s377_s3, [#allocation3]  }
  0xec   :  { %294 = dma.done.wait [#allocation3], 128  }
  0xed   :  { %295 = vsyncadd [#allocation3], 4294967168 }
  0xee   :  { %213 = vsyncpa [#allocation3], 1 }

</bundles_post_ra>
